<compile_context>
chip_gen: v7x
topology: tpu7x:2x2x1
jax: 0.10.0
libtpu: 0.0.40
codegen_flags: <defaults>
</compile_context>

<pallas_src>
import functools

import jax
import jax.numpy as jnp
import numpy as np
from jax import lax
from jax.experimental import pallas as pl
from jax.experimental.pallas import tpu as pltpu


def _conv_out(n, k=3, s=1, p=1):
    return (n + 2 * p - k) // s + 1


def _col_select_matrices(w_in, w_out, stride):
    """R[dx][wi, ow] = 1 iff wi == stride*ow + dx - 1 (padding taps dropped)."""
    r = np.zeros((3, w_in, w_out), np.float32)
    for dx in range(3):
        for ow in range(w_out):
            wi = stride * ow + dx - 1
            if 0 <= wi < w_in:
                r[dx, wi, ow] = 1.0
    return jnp.asarray(r)


def _row_weight_matrices(w_data, h_in, h_out, stride):
    """L[dx][co*Ho+oh, ci*H+hi] = sum_dy w[co,ci,dy,dx] * [hi == stride*oh+dy-1]."""
    co, ci, _, _ = w_data.shape
    sel = np.zeros((3, h_out, h_in), np.float32)
    for dy in range(3):
        for oh in range(h_out):
            hi = stride * oh + dy - 1
            if 0 <= hi < h_in:
                sel[dy, oh, hi] = 1.0
    l = jnp.einsum("oiyx,yhr->xohir", w_data.astype(jnp.float32), jnp.asarray(sel))
    return l.reshape(3, co * h_out, ci * h_in)


def _coord_planes(h, w):
    """AddCoords channels: xx varies along H (x_dim), yy varies along W (y_dim)."""
    xx = np.broadcast_to((2.0 * np.arange(h) / max(h - 1, 1) - 1.0)[:, None], (h, w))
    yy = np.broadcast_to((2.0 * np.arange(w) / max(w - 1, 1) - 1.0)[None, :], (h, w))
    return jnp.asarray(np.stack([xx, yy], 0), dtype=jnp.float32)  # (2, h, w)


def _coord_bias_plane(w_coord, bias, h, w, h_out, stride):
    """Data-independent contribution of the two coord channels + conv bias.
    Weight-only preprocessing (tiny), shape (Co*Ho, Wo)."""
    coords = _coord_planes(h, w)[None]                                   # (1, 2, h, w)
    y = lax.conv_general_dilated(
        coords, w_coord.astype(jnp.float32),
        window_strides=(stride, stride), padding=((1, 1), (1, 1)),
        dimension_numbers=("NCHW", "OIHW", "NCHW"))                      # (1, Co, Ho, Wo)
    y = y[0] + bias.astype(jnp.float32)[:, None, None]
    return y.reshape(w_coord.shape[0] * h_out, -1)


def _fused_kernel(x_ref, l1_ref, r1_ref, base1_ref, l2_ref, r2_ref, base2_ref,
                  o_ref, *, alpha1, alpha2):
    # ---- PReLU #1 on the channel-stacked input plane (C*H, W) ---------------
    x = x_ref[0].astype(jnp.float32)
    x = jnp.where(x >= 0, x, alpha1 * x)

    # ---- conv1 (3x3, stride 2, pad 1): 3 col-select + 3 weight matmuls ------
    acc = base1_ref[...]                                     # coord + bias plane
    for dx in range(3):
        p = jnp.dot(x, r1_ref[dx], preferred_element_type=jnp.float32)
        acc = acc + jnp.dot(l1_ref[dx], p, preferred_element_type=jnp.float32)

    # ---- PReLU #2 ------------------------------------------------------------
    acc = jnp.where(acc >= 0, acc, alpha2 * acc)             # (Co*Ho, Wo)

    # ---- conv2 (3x3, stride 1, pad 1) ----------------------------------------
    out = base2_ref[...]
    for dx in range(3):
        p = jnp.dot(acc, r2_ref[dx], preferred_element_type=jnp.float32)
        out = out + jnp.dot(l2_ref[dx], p, preferred_element_type=jnp.float32)

    # ---- store: (Co*Ho, Wo) is exactly row-major (Co, Ho, Wo) == NCHW --------
    o_ref[0] = out.astype(o_ref.dtype)


@functools.partial(jax.jit, static_argnames=("alpha1", "alpha2"))
def _forward(x, w1, b1, w2, b2, *, alpha1, alpha2):
    B, C, H, W = x.shape
    Co = w1.shape[0]
    assert w1.shape[1] == C + 2 and w2.shape[1] == Co + 2
    Ho, Wo = _conv_out(H, s=2), _conv_out(W, s=2)

    # Weight-only preprocessing (tiny, runs outside the kernel).
    l1 = _row_weight_matrices(w1[:, :C], H, Ho, stride=2)            # (3, Co*Ho, C*H)
    r1 = _col_select_matrices(W, Wo, stride=2)                       # (3, W, Wo)
    base1 = _coord_bias_plane(w1[:, C:], b1, H, W, Ho, stride=2)     # (Co*Ho, Wo)
    l2 = _row_weight_matrices(w2[:, :Co], Ho, Ho, stride=1)          # (3, Co*Ho, Co*Ho)
    r2 = _col_select_matrices(Wo, Wo, stride=1)                      # (3, Wo, Wo)
    base2 = _coord_bias_plane(w2[:, Co:], b2, Ho, Wo, Ho, stride=1)  # (Co*Ho, Wo)

    x2d = x.reshape(B, C * H, W)   # free reshape: NCHW row-major == channel-stacked planes

    kernel = functools.partial(_fused_kernel, alpha1=float(alpha1), alpha2=float(alpha2))

    out = pl.pallas_call(
        kernel,
        out_shape=jax.ShapeDtypeStruct((B, Co * Ho, Wo), x.dtype),
        grid=(B,),
        in_specs=[
            pl.BlockSpec((1, C * H, W), lambda b: (b, 0, 0)),            # x planes
            pl.BlockSpec((3, Co * Ho, C * H), lambda b: (0, 0, 0)),      # L1
            pl.BlockSpec((3, W, Wo), lambda b: (0, 0, 0)),               # R1
            pl.BlockSpec((Co * Ho, Wo), lambda b: (0, 0)),               # base1
            pl.BlockSpec((3, Co * Ho, Co * Ho), lambda b: (0, 0, 0)),    # L2
            pl.BlockSpec((3, Wo, Wo), lambda b: (0, 0, 0)),              # R2
            pl.BlockSpec((Co * Ho, Wo), lambda b: (0, 0)),               # base2
        ],
        out_specs=pl.BlockSpec((1, Co * Ho, Wo), lambda b: (b, 0, 0)),
        compiler_params=pltpu.CompilerParams(
            dimension_semantics=("parallel",)),
    )(x2d, l1, r1, base1, l2, r2, base2)
    # Free reshape: (B, Co*Ho, Wo) -> (B, Co, Ho, Wo), already NCHW.
    return out.reshape(B, Co, Ho, Wo)


def coord_down_sampling_block(x_nchw, params):
    return _forward(x_nchw, params["w1"], params["b1"], params["w2"], params["b2"],
                    alpha1=float(params["alpha1"]), alpha2=float(params["alpha2"]))


# ----------------------------------------------------------------------------
# Pure-JAX reference (matches the PyTorch module semantics)
# ----------------------------------------------------------------------------
def _prelu(x, a):
    return jnp.where(x >= 0, x, a * x)


def _ref_add_coords(x):
    B, C, H, W = x.shape
    xx = 2.0 * jnp.arange(H, dtype=x.dtype) / (H - 1) - 1.0   # varies along H (x_dim)
    yy = 2.0 * jnp.arange(W, dtype=x.dtype) / (W - 1) - 1.0   # varies along W (y_dim)
    xx = jnp.broadcast_to(xx[None, None, :, None], (B, 1, H, W))
    yy = jnp.broadcast_to(yy[None, None, None, :], (B, 1, H, W))
    return jnp.concatenate([x, xx, yy], axis=1)


def _ref_coordconv(x, w, b, stride):
    xc = _ref_add_coords(x)
    y = lax.conv_general_dilated(
        xc, w, window_strides=(stride, stride), padding=((1, 1), (1, 1)),
        dimension_numbers=("NCHW", "OIHW", "NCHW"))
    return y + b[None, :, None, None]


def _ref_forward(x, params):
    y = _prelu(x, params["alpha1"])
    y = _ref_coordconv(y, params["w1"], params["b1"], stride=2)
    y = _prelu(y, params["alpha2"])
    y = _ref_coordconv(y, params["w2"], params["b2"], stride=1)
    return y


# ----------------------------------------------------------------------------
if __name__ == "__main__":
    B, in_ch, H, W = 2, 4, 16, 16
    out_ch = 8

    key = jax.random.PRNGKey(0)
    kx, kw1, kb1, kw2, kb2 = jax.random.split(key, 5)

    x = jax.random.normal(kx, (B, in_ch, H, W), jnp.float32)

    # Deterministic synthetic parameters; conv weights in PyTorch OIHW layout.
    params = {
        "alpha1": 0.25,  # nn.PReLU() default init
        "alpha2": 0.25,
        "w1": 0.05 * jax.random.normal(kw1, (out_ch, in_ch + 2, 3, 3), jnp.float32),
        "b1": 0.05 * jax.random.normal(kb1, (out_ch,), jnp.float32),
        "w2": 0.05 * jax.random.normal(kw2, (out_ch, out_ch + 2, 3, 3), jnp.float32),
        "b2": 0.05 * jax.random.normal(kb2, (out_ch,), jnp.float32),
    }

    out = jax.block_until_ready(coord_down_sampling_block(x, params))
    ref = jax.block_until_ready(_ref_forward(x, params))

    assert out.shape == (B, out_ch, H // 2, W // 2), out.shape
    assert bool(jnp.all(jnp.isfinite(out)))
    max_err = float(jnp.max(jnp.abs(out - ref)))
    assert bool(jnp.allclose(out, ref, atol=1e-3, rtol=1e-3)), max_err

    print("KERNEL_OK")
</pallas_src>

<mosaic_0001>
module attributes {stable_mosaic.version = 11 : i64} {
  func.func @_fused_kernel(%arg0: i32, %arg1: memref<1x64x16xf32, #tpu.memory_space<vmem>>, %arg2: memref<3x64x64xf32, #tpu.memory_space<vmem>>, %arg3: memref<3x16x8xf32, #tpu.memory_space<vmem>>, %arg4: memref<64x8xf32, #tpu.memory_space<vmem>>, %arg5: memref<3x64x64xf32, #tpu.memory_space<vmem>>, %arg6: memref<3x8x8xf32, #tpu.memory_space<vmem>>, %arg7: memref<64x8xf32, #tpu.memory_space<vmem>>, %arg8: memref<1x64x8xf32, #tpu.memory_space<vmem>>) attributes {dimension_semantics = [#tpu.dimension_semantics<parallel>], iteration_bounds = array<i64: 2>, scalar_prefetch = 0 : i64, scratch_operands = 0 : i64, tpu.core_type = #tpu.core_type<tc>, window_params = [{transform_indices = @transform_0, window_bounds = array<i64: 1, 64, 16>}, {pipeline_mode = #tpu.pipeline_mode<synchronous>, transform_indices = @transform_1, window_bounds = array<i64: 3, 64, 64>}, {pipeline_mode = #tpu.pipeline_mode<synchronous>, transform_indices = @transform_2, window_bounds = array<i64: 3, 16, 8>}, {pipeline_mode = #tpu.pipeline_mode<synchronous>, transform_indices = @transform_3, window_bounds = array<i64: 64, 8>}, {pipeline_mode = #tpu.pipeline_mode<synchronous>, transform_indices = @transform_4, window_bounds = array<i64: 3, 64, 64>}, {pipeline_mode = #tpu.pipeline_mode<synchronous>, transform_indices = @transform_5, window_bounds = array<i64: 3, 8, 8>}, {pipeline_mode = #tpu.pipeline_mode<synchronous>, transform_indices = @transform_6, window_bounds = array<i64: 64, 8>}, {transform_indices = @transform_7, window_bounds = array<i64: 1, 64, 8>}]} {
    %c0 = arith.constant 0 : index
    %c0_0 = arith.constant 0 : index
    %c0_1 = arith.constant 0 : index
    %0 = vector.load %arg1[%c0, %c0_0, %c0_1] : memref<1x64x16xf32, #tpu.memory_space<vmem>>, vector<1x64x16xf32>
    %1 = vector.shape_cast %0 : vector<1x64x16xf32> to vector<64x16xf32>
    %cst = arith.constant 0.000000e+00 : f32
    %2 = vector.broadcast %cst : f32 to vector<64x16xf32>
    %3 = arith.cmpf oge, %1, %2 : vector<64x16xf32>
    %cst_2 = arith.constant 2.500000e-01 : f32
    %4 = vector.broadcast %cst_2 : f32 to vector<64x16xf32>
    %5 = arith.mulf %4, %1 : vector<64x16xf32>
    %6 = arith.select %3, %1, %5 : vector<64x16xi1>, vector<64x16xf32>
    %c0_3 = arith.constant 0 : index
    %c0_4 = arith.constant 0 : index
    %7 = vector.load %arg4[%c0_3, %c0_4] : memref<64x8xf32, #tpu.memory_space<vmem>>, vector<64x8xf32>
    %c0_5 = arith.constant 0 : index
    %c0_6 = arith.constant 0 : index
    %c0_7 = arith.constant 0 : index
    %8 = vector.load %arg3[%c0_5, %c0_6, %c0_7] : memref<3x16x8xf32, #tpu.memory_space<vmem>>, vector<1x16x8xf32>
    %9 = vector.shape_cast %8 : vector<1x16x8xf32> to vector<16x8xf32>
    %cst_8 = arith.constant dense<0.000000e+00> : vector<64x8xf32>
    %10 = tpu.matmul %6, %9, %cst_8 {dimension_numbers = #tpu.dot_dimension_numbers<[1], [0], [0], [1], [0, 0, 1, 1], [], []>} : vector<64x16xf32>, vector<16x8xf32>, vector<64x8xf32> -> vector<64x8xf32>
    %c0_9 = arith.constant 0 : index
    %c0_10 = arith.constant 0 : index
    %c0_11 = arith.constant 0 : index
    %11 = vector.load %arg2[%c0_9, %c0_10, %c0_11] : memref<3x64x64xf32, #tpu.memory_space<vmem>>, vector<1x64x64xf32>
    %12 = vector.shape_cast %11 : vector<1x64x64xf32> to vector<64x64xf32>
    %cst_12 = arith.constant dense<0.000000e+00> : vector<64x8xf32>
    %13 = tpu.matmul %12, %10, %cst_12 {dimension_numbers = #tpu.dot_dimension_numbers<[1], [0], [0], [1], [0, 0, 1, 1], [], []>} : vector<64x64xf32>, vector<64x8xf32>, vector<64x8xf32> -> vector<64x8xf32>
    %14 = arith.addf %7, %13 : vector<64x8xf32>
    %c1 = arith.constant 1 : index
    %c0_13 = arith.constant 0 : index
    %c0_14 = arith.constant 0 : index
    %15 = vector.load %arg3[%c1, %c0_13, %c0_14] : memref<3x16x8xf32, #tpu.memory_space<vmem>>, vector<1x16x8xf32>
    %16 = vector.shape_cast %15 : vector<1x16x8xf32> to vector<16x8xf32>
    %cst_15 = arith.constant dense<0.000000e+00> : vector<64x8xf32>
    %17 = tpu.matmul %6, %16, %cst_15 {dimension_numbers = #tpu.dot_dimension_numbers<[1], [0], [0], [1], [0, 0, 1, 1], [], []>} : vector<64x16xf32>, vector<16x8xf32>, vector<64x8xf32> -> vector<64x8xf32>
    %c1_16 = arith.constant 1 : index
    %c0_17 = arith.constant 0 : index
    %c0_18 = arith.constant 0 : index
    %18 = vector.load %arg2[%c1_16, %c0_17, %c0_18] : memref<3x64x64xf32, #tpu.memory_space<vmem>>, vector<1x64x64xf32>
    %19 = vector.shape_cast %18 : vector<1x64x64xf32> to vector<64x64xf32>
    %cst_19 = arith.constant dense<0.000000e+00> : vector<64x8xf32>
    %20 = tpu.matmul %19, %17, %cst_19 {dimension_numbers = #tpu.dot_dimension_numbers<[1], [0], [0], [1], [0, 0, 1, 1], [], []>} : vector<64x64xf32>, vector<64x8xf32>, vector<64x8xf32> -> vector<64x8xf32>
    %21 = arith.addf %14, %20 : vector<64x8xf32>
    %c2 = arith.constant 2 : index
    %c0_20 = arith.constant 0 : index
    %c0_21 = arith.constant 0 : index
    %22 = vector.load %arg3[%c2, %c0_20, %c0_21] : memref<3x16x8xf32, #tpu.memory_space<vmem>>, vector<1x16x8xf32>
    %23 = vector.shape_cast %22 : vector<1x16x8xf32> to vector<16x8xf32>
    %cst_22 = arith.constant dense<0.000000e+00> : vector<64x8xf32>
    %24 = tpu.matmul %6, %23, %cst_22 {dimension_numbers = #tpu.dot_dimension_numbers<[1], [0], [0], [1], [0, 0, 1, 1], [], []>} : vector<64x16xf32>, vector<16x8xf32>, vector<64x8xf32> -> vector<64x8xf32>
    %c2_23 = arith.constant 2 : index
    %c0_24 = arith.constant 0 : index
    %c0_25 = arith.constant 0 : index
    %25 = vector.load %arg2[%c2_23, %c0_24, %c0_25] : memref<3x64x64xf32, #tpu.memory_space<vmem>>, vector<1x64x64xf32>
    %26 = vector.shape_cast %25 : vector<1x64x64xf32> to vector<64x64xf32>
    %cst_26 = arith.constant dense<0.000000e+00> : vector<64x8xf32>
    %27 = tpu.matmul %26, %24, %cst_26 {dimension_numbers = #tpu.dot_dimension_numbers<[1], [0], [0], [1], [0, 0, 1, 1], [], []>} : vector<64x64xf32>, vector<64x8xf32>, vector<64x8xf32> -> vector<64x8xf32>
    %28 = arith.addf %21, %27 : vector<64x8xf32>
    %cst_27 = arith.constant 0.000000e+00 : f32
    %29 = vector.broadcast %cst_27 : f32 to vector<64x8xf32>
    %30 = arith.cmpf oge, %28, %29 : vector<64x8xf32>
    %cst_28 = arith.constant 2.500000e-01 : f32
    %31 = vector.broadcast %cst_28 : f32 to vector<64x8xf32>
    %32 = arith.mulf %31, %28 : vector<64x8xf32>
    %33 = arith.select %30, %28, %32 : vector<64x8xi1>, vector<64x8xf32>
    %c0_29 = arith.constant 0 : index
    %c0_30 = arith.constant 0 : index
    %34 = vector.load %arg7[%c0_29, %c0_30] : memref<64x8xf32, #tpu.memory_space<vmem>>, vector<64x8xf32>
    %c0_31 = arith.constant 0 : index
    %c0_32 = arith.constant 0 : index
    %c0_33 = arith.constant 0 : index
    %35 = vector.load %arg6[%c0_31, %c0_32, %c0_33] : memref<3x8x8xf32, #tpu.memory_space<vmem>>, vector<1x8x8xf32>
    %36 = vector.shape_cast %35 : vector<1x8x8xf32> to vector<8x8xf32>
    %cst_34 = arith.constant dense<0.000000e+00> : vector<64x8xf32>
    %37 = tpu.matmul %33, %36, %cst_34 {dimension_numbers = #tpu.dot_dimension_numbers<[1], [0], [0], [1], [0, 0, 1, 1], [], []>} : vector<64x8xf32>, vector<8x8xf32>, vector<64x8xf32> -> vector<64x8xf32>
    %c0_35 = arith.constant 0 : index
    %c0_36 = arith.constant 0 : index
    %c0_37 = arith.constant 0 : index
    %38 = vector.load %arg5[%c0_35, %c0_36, %c0_37] : memref<3x64x64xf32, #tpu.memory_space<vmem>>, vector<1x64x64xf32>
    %39 = vector.shape_cast %38 : vector<1x64x64xf32> to vector<64x64xf32>
    %cst_38 = arith.constant dense<0.000000e+00> : vector<64x8xf32>
    %40 = tpu.matmul %39, %37, %cst_38 {dimension_numbers = #tpu.dot_dimension_numbers<[1], [0], [0], [1], [0, 0, 1, 1], [], []>} : vector<64x64xf32>, vector<64x8xf32>, vector<64x8xf32> -> vector<64x8xf32>
    %41 = arith.addf %34, %40 : vector<64x8xf32>
    %c1_39 = arith.constant 1 : index
    %c0_40 = arith.constant 0 : index
    %c0_41 = arith.constant 0 : index
    %42 = vector.load %arg6[%c1_39, %c0_40, %c0_41] : memref<3x8x8xf32, #tpu.memory_space<vmem>>, vector<1x8x8xf32>
    %43 = vector.shape_cast %42 : vector<1x8x8xf32> to vector<8x8xf32>
    %cst_42 = arith.constant dense<0.000000e+00> : vector<64x8xf32>
    %44 = tpu.matmul %33, %43, %cst_42 {dimension_numbers = #tpu.dot_dimension_numbers<[1], [0], [0], [1], [0, 0, 1, 1], [], []>} : vector<64x8xf32>, vector<8x8xf32>, vector<64x8xf32> -> vector<64x8xf32>
    %c1_43 = arith.constant 1 : index
    %c0_44 = arith.constant 0 : index
    %c0_45 = arith.constant 0 : index
    %45 = vector.load %arg5[%c1_43, %c0_44, %c0_45] : memref<3x64x64xf32, #tpu.memory_space<vmem>>, vector<1x64x64xf32>
    %46 = vector.shape_cast %45 : vector<1x64x64xf32> to vector<64x64xf32>
    %cst_46 = arith.constant dense<0.000000e+00> : vector<64x8xf32>
    %47 = tpu.matmul %46, %44, %cst_46 {dimension_numbers = #tpu.dot_dimension_numbers<[1], [0], [0], [1], [0, 0, 1, 1], [], []>} : vector<64x64xf32>, vector<64x8xf32>, vector<64x8xf32> -> vector<64x8xf32>
    %48 = arith.addf %41, %47 : vector<64x8xf32>
    %c2_47 = arith.constant 2 : index
    %c0_48 = arith.constant 0 : index
    %c0_49 = arith.constant 0 : index
    %49 = vector.load %arg6[%c2_47, %c0_48, %c0_49] : memref<3x8x8xf32, #tpu.memory_space<vmem>>, vector<1x8x8xf32>
    %50 = vector.shape_cast %49 : vector<1x8x8xf32> to vector<8x8xf32>
    %cst_50 = arith.constant dense<0.000000e+00> : vector<64x8xf32>
    %51 = tpu.matmul %33, %50, %cst_50 {dimension_numbers = #tpu.dot_dimension_numbers<[1], [0], [0], [1], [0, 0, 1, 1], [], []>} : vector<64x8xf32>, vector<8x8xf32>, vector<64x8xf32> -> vector<64x8xf32>
    %c2_51 = arith.constant 2 : index
    %c0_52 = arith.constant 0 : index
    %c0_53 = arith.constant 0 : index
    %52 = vector.load %arg5[%c2_51, %c0_52, %c0_53] : memref<3x64x64xf32, #tpu.memory_space<vmem>>, vector<1x64x64xf32>
    %53 = vector.shape_cast %52 : vector<1x64x64xf32> to vector<64x64xf32>
    %cst_54 = arith.constant dense<0.000000e+00> : vector<64x8xf32>
    %54 = tpu.matmul %53, %51, %cst_54 {dimension_numbers = #tpu.dot_dimension_numbers<[1], [0], [0], [1], [0, 0, 1, 1], [], []>} : vector<64x64xf32>, vector<64x8xf32>, vector<64x8xf32> -> vector<64x8xf32>
    %55 = arith.addf %48, %54 : vector<64x8xf32>
    %c0_55 = arith.constant 0 : index
    %c0_56 = arith.constant 0 : index
    %c0_57 = arith.constant 0 : index
    %56 = vector.load %arg8[%c0_55, %c0_56, %c0_57] : memref<1x64x8xf32, #tpu.memory_space<vmem>>, vector<1x64x8xf32>
    %57 = vector.shape_cast %56 : vector<1x64x8xf32> to vector<64x8xf32>
    %58 = vector.shape_cast %55 : vector<64x8xf32> to vector<1x64x8xf32>
    tpu.vector_store %arg8[%c0_55, %c0_56, %c0_57], %58 {strides = array<i32>} : memref<1x64x8xf32, #tpu.memory_space<vmem>>, vector<1x64x8xf32>,
    return
  }
  func.func @transform_0(%arg0: i32) -> (i32, i32, i32) {
    %c0_i32 = arith.constant 0 : i32
    %c0_i32_0 = arith.constant 0 : i32
    %c0_i32_1 = arith.constant 0 : i32
    return %arg0, %c0_i32, %c0_i32_0 : i32, i32, i32
  }
  func.func @transform_1(%arg0: i32) -> (i32, i32, i32) {
    %c0_i32 = arith.constant 0 : i32
    %c0_i32_0 = arith.constant 0 : i32
    %c0_i32_1 = arith.constant 0 : i32
    %c0_i32_2 = arith.constant 0 : i32
    return %c0_i32, %c0_i32_0, %c0_i32_1 : i32, i32, i32
  }
  func.func @transform_2(%arg0: i32) -> (i32, i32, i32) {
    %c0_i32 = arith.constant 0 : i32
    %c0_i32_0 = arith.constant 0 : i32
    %c0_i32_1 = arith.constant 0 : i32
    %c0_i32_2 = arith.constant 0 : i32
    return %c0_i32, %c0_i32_0, %c0_i32_1 : i32, i32, i32
  }
  func.func @transform_3(%arg0: i32) -> (i32, i32) {
    %c0_i32 = arith.constant 0 : i32
    %c0_i32_0 = arith.constant 0 : i32
    %c0_i32_1 = arith.constant 0 : i32
    return %c0_i32, %c0_i32_0 : i32, i32
  }
  func.func @transform_4(%arg0: i32) -> (i32, i32, i32) {
    %c0_i32 = arith.constant 0 : i32
    %c0_i32_0 = arith.constant 0 : i32
    %c0_i32_1 = arith.constant 0 : i32
    %c0_i32_2 = arith.constant 0 : i32
    return %c0_i32, %c0_i32_0, %c0_i32_1 : i32, i32, i32
  }
  func.func @transform_5(%arg0: i32) -> (i32, i32, i32) {
    %c0_i32 = arith.constant 0 : i32
    %c0_i32_0 = arith.constant 0 : i32
    %c0_i32_1 = arith.constant 0 : i32
    %c0_i32_2 = arith.constant 0 : i32
    return %c0_i32, %c0_i32_0, %c0_i32_1 : i32, i32, i32
  }
  func.func @transform_6(%arg0: i32) -> (i32, i32) {
    %c0_i32 = arith.constant 0 : i32
    %c0_i32_0 = arith.constant 0 : i32
    %c0_i32_1 = arith.constant 0 : i32
    return %c0_i32, %c0_i32_0 : i32, i32
  }
  func.func @transform_7(%arg0: i32) -> (i32, i32, i32) {
    %c0_i32 = arith.constant 0 : i32
    %c0_i32_0 = arith.constant 0 : i32
    %c0_i32_1 = arith.constant 0 : i32
    return %arg0, %c0_i32, %c0_i32_0 : i32, i32, i32
  }
}

</mosaic_0001>

<bundles_post_ra>
// kernel: _forward.1
= control target key start
LH: loop header
LB: loop body
LE: loop exit
PB: predicated region body
PF: predicated region fallthrough
CT: control target
= control target key end

     0   :  { %12 = vsyncpa [#allocation3], 0  ;;  %s3312_s0 = inlined_call_operand.vmem [shape: f32[2,64,16], index: 0, kind: input, shape index: {}]   ;;  %s3313_s1 = inlined_call_operand.vmem [shape: f32[3,64,64], index: 1, kind: input, shape index: {}]   ;;  %s3314_s2 = inlined_call_operand.vmem [shape: f32[3,16,8], index: 2, kind: input, shape index: {}]   ;;  %s3315_s3 = inlined_call_operand.vmem [shape: f32[64,8], index: 3, kind: input, shape index: {}]   ;;  %s3316_s4 = inlined_call_operand.vmem [shape: f32[3,64,64], index: 4, kind: input, shape index: {}]   ;;  %s3317_s5 = inlined_call_operand.vmem [shape: f32[3,8,8], index: 5, kind: input, shape index: {}]   ;;  %s3318_s6 = inlined_call_operand.vmem [shape: f32[64,8], index: 6, kind: input, shape index: {}]   ;;  %s3319_s7 = inlined_call_operand.hbm [shape: f32[2,64,8], index: 7, kind: output, shape index: {}]  }
   0x1   :  { %14 = vsyncpa [#allocation3 + $0x1], 0  ;;  %s2872_s24 = smov 0   ;;  %s2874_s25 = smov 0  }
   0x2   :  { %s2876_s26 = smov 0   ;;  %s2878_s27 = smov 0  }
   0x3 LB: > { %s2893_s28 = sadd.s32 4294967295, %s2827_s27   ;;  %s2001_s29 = sadd.s32 4294967294, %s2827_s27   ;;  %s2827_s27 = sphi %s2878_s27, %s3325_s27   ;;  %s2823_s26 = sphi %s2876_s26, %s3324_s26   ;;  %s2819_s25 = sphi %s2874_s25, %s3323_s25   ;;  %s2815_s24 = sphi %s2872_s24, %s3322_s24  }
   0x4   : > { %s2897_s30 = sadd.s32 1, %s2827_s27   ;;  %s179_s8 = sadd.s32 1, %s2823_s26 }
   0x5   : > { %s176_s9 = ssub.s32 %s2827_s27, %s2897_s30  ;;  %p189_p0 = scmp.ne.s32.totalorder %s2823_s26, %s2819_s25 }
   0x6   : > { %p177_p1 = scmp.eq.s32.totalorder %s176_s9, 0  ;;  %p190_p2 = scmp.eq.s32.totalorder %s2893_s28, 1 }
   0x7   : > { %p195_p3 = scmp.ne.s32.totalorder %s2819_s25, %s2815_s24  ;;  %p196_p4 = scmp.eq.s32.totalorder %s2001_s29, 1 }
   0x8   : > { %s2908_s10 = scalar_select %p177_p1, %s2823_s26, %s179_s8  }
   0x9   : > { %p2910_p5 = por %p190_p2, %p189_p0  ;;  %p2914_p6 = por %p196_p4, %p195_p3 }
   0xa   : > { %p2004_p7 = scmp.ge.s32.totalorder %s2827_s27, 1  ;;  %p240_p8 = scmp.lt.s32.totalorder %s2827_s27, 3 }
   0xc   : > { %p241_p9 = pnand %p2004_p7, %p240_p8 }
   0xd   : > { %v317_v0 = vld [vmem:[%s3314_s2] sm:$0xff] (!%p241_p9)  ;;  %v318_v1 = vld [vmem:[%s3314_s2 + $0x8] sm:$0xff] (!%p241_p9)  ;;  %p272_p10 = scmp.lt.s32.totalorder (!%p241_p9), %s2893_s28, 1  ;;  %v2024_v2 = vld [vmem:[%s3314_s2 + $0x10] sm:$0xff] (!%p241_p9)  ;;  %vm319_vm0 = vcmask (!%p241_p9), 130048   ;;  %vm457_vm9 = vcmask (!%p241_p9), 523264  }
   0xe   : > { %244 = sbr.rel (%p241_p9) target bundleno = 1014 (0x3f6), region = 48  ;;  %v2560_v3 = vpack.c.bf16 (!%p241_p9), %v318_v1, %v317_v0  ;;  %v2025_v4 = vld [vmem:[%s3314_s2 + $0x18] sm:$0xff] (!%p241_p9)  ;;  %v2050_v6 = vld [vmem:[%s3314_s2 + $0x20] sm:$0xff] (!%p241_p9)  ;;  %v2051_v7 = vld [vmem:[%s3314_s2 + $0x28] sm:$0xff] (!%p241_p9)  ;;  %vm1136_vm12 = vcmask (!%p241_p9), 64512   ;;  %s2148_s9 = sshll.u32 (!%p241_p9), %s2893_s28, 10 }
   0xf   : > { %v2580_v5 = vpack.c.bf16 (!%p241_p9), %v2025_v4, %v2024_v2  ;;  %v2600_v17 = vpack.c.bf16 (!%p241_p9), %v2051_v7, %v2050_v6  ;;  %v449_v33 = vld [vmem:[%s3313_s1] sm:$0xff] (!%p241_p9)  ;;  %v450_v49 = vld [vmem:[%s3313_s1 + $0x8] sm:$0xff] (!%p241_p9)  ;;  %v451_v51 = vld [vmem:[%s3313_s1 + $0x10] sm:$0xff] (!%p241_p9)  ;;  %s3263_s19 = scalar_lea.hbm (!%p241_p9), %s3319_s7, %s2148_s9 }
  0x10   : > { %2561 = vmatprep.subr.bf16.mxu0 (!%p241_p9), %v2560_v3  ;;  %2334 = vmatprep.mubr.msk.f32.mxu1 (!%p241_p9), %vm457_vm9, %v449_v33  ;;  %v1135_v34 = vld [vmem:[%s3317_s5] sm:$0xff] (!%p241_p9)  ;;  %v452_v54 = vld [vmem:[%s3313_s1 + $0x18] sm:$0xff] (!%p241_p9)  ;;  %v454_v59 = vld [vmem:[%s3313_s1 + $0x28] sm:$0xff] (!%p241_p9) }
  0x11   : > { %2563 = vmatpush3.bf16.msra.mxu0 (!%p241_p9), %v2560_v3  ;;  %v453_v56 = vld [vmem:[%s3313_s1 + $0x20] sm:$0xff] (!%p241_p9)  ;;  %v455_v61 = vld [vmem:[%s3313_s1 + $0x30] sm:$0xff] (!%p241_p9)  ;;  %v456_v0 = vld [vmem:[%s3313_s1 + $0x38] sm:$0xff] (!%p241_p9) }
  0x12   : > { %2581 = vmatprep.subr.bf16.mxu0 (!%p241_p9), %v2580_v5  ;;  %v2034_v2 = vld [vmem:[%s3313_s1 + $0x40] sm:$0xff] (!%p241_p9)  ;;  %v2036_v7 = vld [vmem:[%s3313_s1 + $0x50] sm:$0xff] (!%p241_p9) }
  0x15   : > { %s273_s21 = scalar_select %p272_p10, %s2893_s28, 1 }
  0x17   : > { %s2147_s22 = sshll.u32 %s273_s21, 6  ;;  %s2829_s21 = smov [#allocation2]  }
  0x18   : > { %s2937_s8 = scalar_lea.vmem %s3312_s0, %s2147_s22  ;;  %s269_s22 = sand.u32 1, %s2819_s25  }
  0x19   : > { %v277_v8 = vld [vmem:[%s2937_s8] sm:$0xff]  ;;  %v278_v9 = vld [vmem:[%s2937_s8 + $0x8] sm:$0xff]  ;;  %v279_v10 = vld [vmem:[%s2937_s8 + $0x10] sm:$0xff]  ;;  %s2005_s13 = sshll.u32 %s269_s22, 6  ;;  %s3271_s28 = scalar_lea.sflag [#allocation3], %s269_s22 }
  0x1a   : > { %vm285_vm1 = vcmp.ge.f32.partialorder %v277_v8, 0.0  ;;  %v293_v11 = vmul.f32 0.25, %v277_v8  ;;  %vm286_vm2 = vcmp.ge.f32.partialorder %v278_v9, 0.0  ;;  %v294_v12 = vmul.f32 0.25, %v278_v9  ;;  %v280_v13 = vld [vmem:[%s2937_s8 + $0x18] sm:$0xff]  ;;  %v281_v14 = vld [vmem:[%s2937_s8 + $0x20] sm:$0xff] }
  0x1b   : > { %vm287_vm3 = vcmp.ge.f32.partialorder %v279_v10, 0.0  ;;  %v295_v15 = vmul.f32 0.25, %v279_v10  ;;  %v296_v16 = vmul.f32 0.25, %v280_v13  ;;  %vm288_vm4 = vcmp.ge.f32.partialorder %v280_v13, 0.0  ;;  %v282_v21 = vld [vmem:[%s2937_s8 + $0x28] sm:$0xff]  ;;  %v283_v23 = vld [vmem:[%s2937_s8 + $0x30] sm:$0xff] }
  0x1c   : > { %v301_v18 = vsel %vm285_vm1, %v277_v8, %v293_v11  ;;  %v302_v19 = vsel %vm286_vm2, %v278_v9, %v294_v12  ;;  %v297_v20 = vmul.f32 0.25, %v281_v14  ;;  %vm289_vm5 = vcmp.ge.f32.partialorder %v281_v14, 0.0  ;;  %v284_v28 = vld [vmem:[%s2937_s8 + $0x38] sm:$0xff]  ;;  %v2038_v12 = vld [vmem:[%s3313_s1 + $0x60] sm:$0xff]  ;;  %s271_s18 = scalar_lea.vmem [#allocation2], %s2005_s13  ;;  %s2769_s23 = sshll.u32 %s2829_s21, 4  ;;  %s2770_s23 = int_to_ptr.vmem [resolvable:$false] %s2769_s23 }
  0x1d   : > { %2306 = vmatprep.mubr.msk.f32.mxu0 %vm319_vm0, %v301_v18  ;;  %v303_v22 = vsel %vm287_vm3, %v279_v10, %v295_v15  ;;  %v304_v24 = vsel %vm288_vm4, %v280_v13, %v296_v16  ;;  %v298_v25 = vmul.f32 0.25, %v282_v21  ;;  %vm290_vm6 = vcmp.ge.f32.partialorder %v282_v21, 0.0  ;;  %v2037_v10 = vld [vmem:[%s3313_s1 + $0x58] sm:$0xff]  ;;  %v2039_v15 = vld [vmem:[%s3313_s1 + $0x68] sm:$0xff]  ;;  %s1939_s13 = sshll.u32 %s271_s18, 4  ;;  %s2771_s29 = scalar_lea.vmem %s2770_s23, 2048  ;;  %s3265_s13 = int_to_ptr.vmem [resolvable:$true] %s1939_s13 }
  0x1e   : > { %2307 = vmatmul.mubr.msk.f32.vlgmr.msra.gmra.mrb[0].mxu0 %vm319_vm0, %v302_v19  ;;  %v305_v26 = vsel %vm289_vm5, %v281_v14, %v297_v20  ;;  %v299_v27 = vmul.f32 0.25, %v283_v23  ;;  %vm291_vm7 = vcmp.ge.f32.partialorder %v283_v23, 0.0  ;;  %v300_v30 = vmul.f32 0.25, %v284_v28  ;;  %v2041_v20 = vld [vmem:[%s3313_s1 + $0x78] sm:$0xff]  ;;  %s2765_s20 = scalar_lea.vmem %s3265_s13, 1024  ;;  %p2772_p0 = scmp.lt.s32.totalorder %s3265_s13, %s2770_s23 }
  0x1f   : > { %2583 = vmatpush3.bf16.msra.mxu0 %v2580_v5  ;;  %2309 = vmatprep.mubr.msk.f32.mxu0 %vm319_vm0, %v303_v22  ;;  %v306_v29 = vsel %vm290_vm6, %v282_v21, %v298_v25  ;;  %vm292_vm8 = vcmp.ge.f32.partialorder %v284_v28, 0.0  ;;  %v2035_v5 = vld [vmem:[%s3313_s1 + $0x48] sm:$0xff]  ;;  %v2063_v25 = vld [vmem:[%s3313_s1 + $0x98] sm:$0xff]  ;;  %p2766_p11 = scmp.ne.s32.totalorder %s3265_s13, %s2765_s20  ;;  %p2773_p1 = scmp.lt.s32.totalorder %s2771_s29, %s2765_s20 }
  0x20   : > { %2601 = vmatprep.subr.bf16.mxu0 %v2600_v17  ;;  %v307_v31 = vsel %vm291_vm7, %v283_v23, %v299_v27  ;;  %v308_v32 = vsel %vm292_vm8, %v284_v28, %v300_v30  ;;  %v2061_v23 = vld [vmem:[%s3313_s1 + $0x88] sm:$0xff]  ;;  %v2066_v28 = vld [vmem:[%s3313_s1 + $0xb0] sm:$0xff] }
  0x21   : > { %v2065_v27 = vld [vmem:[%s3313_s1 + $0xa8] sm:$0xff]  ;;  %p2767_p12 = pnand %p2766_p11, %p2910_p5  ;;  %p2774_p2 = por %p2773_p1, %p2772_p0 }
  0x22   : > { %2310 = vmatmul.mubr.msk.f32.gmra.mrb[2].mxu0 %vm319_vm0, %v304_v24  ;;  %v2092_v30 = vld [vmem:[%s3317_s5 + $0x8] sm:$0xff] }
  0x23   : > { %2312 = vmatprep.mubr.msk.f32.mxu0 %vm319_vm0, %v305_v26  ;;  %p2768_p13 = pneg %p2767_p12 }
  0x25   : > { %p2775_p3 = pnand %p2774_p2, %p2768_p13 }
  0x26   : > { %2313 = vmatmul.mubr.msk.f32.gmra.mrb[4].mxu0 %vm319_vm0, %v306_v29 }
  0x27   : > { %2315 = vmatprep.mubr.msk.f32.mxu0 %vm319_vm0, %v307_v31 }
  0x2a   : > { %2316 = vmatmul.mubr.msk.f32.gmra.mrb[6].mxu0 %vm319_vm0, %v308_v32 }
  0x2b   : > { %2350 = vmatprep.mubr.msk.f32.mxu0 %vm319_vm0, %v301_v18 }
  0x2e   : > { %2351 = vmatmul.mubr.msk.f32.vlgmr.msra.gmra.mrb[8].mxu0 %vm319_vm0, %v302_v19 }
  0x2f   : > { %2603 = vmatpush3.bf16.msra.mxu0 %v2600_v17  ;;  %2353 = vmatprep.mubr.msk.f32.mxu0 %vm319_vm0, %v303_v22  ;;  %v2040_v17 = vld [vmem:[%s3313_s1 + $0x70] sm:$0xff] }
  0x30   : > { %2434 = vmatprep.subr.mxu0 %v1135_v34 }
  0x32   : > { %2354 = vmatmul.mubr.msk.f32.gmra.mrb[10].mxu0 %vm319_vm0, %v304_v24 }
  0x33   : > { %2356 = vmatprep.mubr.msk.f32.mxu0 %vm319_vm0, %v305_v26 }
  0x36   : > { %2357 = vmatmul.mubr.msk.f32.gmra.mrb[12].mxu0 %vm319_vm0, %v306_v29 }
  0x37   : > { %2359 = vmatprep.mubr.msk.f32.mxu0 %vm319_vm0, %v307_v31 }
  0x3a   : > { %2360 = vmatmul.mubr.msk.f32.gmra.mrb[14].mxu0 %vm319_vm0, %v308_v32 }
  0x3b   : > { %2394 = vmatprep.mubr.msk.f32.mxu0 %vm319_vm0, %v301_v18 }
  0x3e   : > { %2395 = vmatmul.mubr.msk.f32.vlgmr.msra.gmra.mrb[16].mxu0 %vm319_vm0, %v302_v19 }
  0x3f   : > { %2397 = vmatprep.mubr.msk.f32.mxu0 %vm319_vm0, %v303_v22  ;;  %2435 = vmatpush3.msra.mxu0 %v1135_v34  ;;  %v2060_v22 = vld [vmem:[%s3313_s1 + $0x80] sm:$0xff] }
  0x40   : > { %2476 = vmatprep.subr.mxu0 %v2092_v30 }
  0x42   : > { %2398 = vmatmul.mubr.msk.f32.gmra.mrb[18].mxu0 %vm319_vm0, %v304_v24  ;;  %v2062_v24 = vld [vmem:[%s3313_s1 + $0x90] sm:$0xff] }
  0x43   : > { %2400 = vmatprep.mubr.msk.f32.mxu0 %vm319_vm0, %v305_v26  ;;  %v2064_v26 = vld [vmem:[%s3313_s1 + $0xa0] sm:$0xff] }
  0x46   : > { %2401 = vmatmul.mubr.msk.f32.gmra.mrb[20].mxu0 %vm319_vm0, %v306_v29  ;;  %v2067_v29 = vld [vmem:[%s3313_s1 + $0xb8] sm:$0xff] }
  0x47   : > { %2403 = vmatprep.mubr.msk.f32.mxu0 %vm319_vm0, %v307_v31  ;;  %v310_v31 = vld [vmem:[%s3315_s3 + $0x8] sm:$0xff] }
  0x4a   : > { %2404 = vmatmul.mubr.msk.f32.gmra.mrb[22].mxu0 %vm319_vm0, %v308_v32  ;;  %v309_v32 = vld [vmem:[%s3315_s3] sm:$0xff] }
  0xf1   : > { %v2308_v35 = vpop.f32.mrb[0].mxu0 }
  0xf2   : > { %v410_v36 = vpop.f32.mrb[1].mxu0 }
  0xf3   : > { %v2564_v37 = vpack.c.bf16 %v2308_v35, %v410_v36 }
  0xf5   : > { %v2311_v38 = vpop.f32.mrb[2].mxu0  ;;  %2565 = vmatprep.subr.bf16.mxu1 %v2564_v37 }
  0xf6   : > { %v420_v39 = vpop.f32.mrb[3].mxu0  ;;  %2567 = vmatpush3.bf16.msra.mxu1 %v2564_v37  ;;  %v312_v37 = vld [vmem:[%s3315_s3 + $0x18] sm:$0xff] }
  0xf7   : > { %v2568_v40 = vpack.c.bf16 %v2311_v38, %v420_v39  ;;  %v311_v39 = vld [vmem:[%s3315_s3 + $0x10] sm:$0xff] }
  0xf9   : > { %v2314_v41 = vpop.f32.mrb[4].mxu0  ;;  %2569 = vmatprep.subr.bf16.mxu1 %v2568_v40 }
  0xfa   : > { %v430_v42 = vpop.f32.mrb[5].mxu0  ;;  %2571 = vmatpush3.bf16.msra.mxu1 %v2568_v40 }
  0xfb   : > { %v2572_v43 = vpack.c.bf16 %v2314_v41, %v430_v42 }
  0xfd   : > { %v2317_v44 = vpop.f32.mrb[6].mxu0  ;;  %2573 = vmatprep.subr.bf16.mxu1 %v2572_v43 }
  0xfe   : > { %v440_v45 = vpop.f32.mrb[7].mxu0  ;;  %2575 = vmatpush3.bf16.msra.mxu1 %v2572_v43 }
  0xff   : > { %v2576_v46 = vpack.c.bf16 %v2317_v44, %v440_v45 }
 0x101   : > { %2577 = vmatprep.subr.bf16.mxu1 %v2576_v46  ;;  %v2352_v47 = vpop.f32.mrb[8].mxu0 }
 0x102   : > { %2579 = vmatpush3.bf16.msra.mxu1 %v2576_v46  ;;  %v664_v48 = vpop.f32.mrb[9].mxu0  ;;  %v314_v46 = vld [vmem:[%s3315_s3 + $0x28] sm:$0xff] }
 0x103   : > { %v2584_v50 = vpack.c.bf16 %v2352_v47, %v664_v48 }
 0x105   : > { %2335 = vmatmul.mubr.msk.f32.vlgmr.msra.gmra.mrb[0].mxu1 %vm457_vm9, %v450_v49  ;;  %v2355_v52 = vpop.f32.mrb[10].mxu0  ;;  %2585 = vmatprep.subr.bf16.mxu1 %v2584_v50  ;;  %v313_v49 = vld [vmem:[%s3315_s3 + $0x20] sm:$0xff] }
 0x106   : > { %v674_v53 = vpop.f32.mrb[11].mxu0  ;;  %2587 = vmatpush3.bf16.msra.mxu1 %v2584_v50  ;;  %2337 = vmatprep.mubr.msk.f32.mxu1 %vm457_vm9, %v451_v51  ;;  %v2117_v50 = vld [vmem:[%s3317_s5 + $0x10] sm:$0xff] }
 0x107   : > { %v2588_v55 = vpack.c.bf16 %v2355_v52, %v674_v53 }
 0x109   : > { %2338 = vmatmul.mubr.msk.f32.gmra.mrb[2].mxu1 %vm457_vm9, %v452_v54  ;;  %v2358_v57 = vpop.f32.mrb[12].mxu0  ;;  %2589 = vmatprep.subr.bf16.mxu1 %v2588_v55 }
 0x10a   : > { %v684_v58 = vpop.f32.mrb[13].mxu0  ;;  %2591 = vmatpush3.bf16.msra.mxu1 %v2588_v55  ;;  %2340 = vmatprep.mubr.msk.f32.mxu1 %vm457_vm9, %v453_v56 }
 0x10b   : > { %v2592_v60 = vpack.c.bf16 %v2358_v57, %v684_v58  ;;  %v316_v57 = vld [vmem:[%s3315_s3 + $0x38] sm:$0xff] }
 0x10d   : > { %2341 = vmatmul.mubr.msk.f32.gmra.mrb[4].mxu1 %vm457_vm9, %v454_v59  ;;  %v2361_v62 = vpop.f32.mrb[14].mxu0  ;;  %2593 = vmatprep.subr.bf16.mxu1 %v2592_v60 }
 0x10e   : > { %v694_v63 = vpop.f32.mrb[15].mxu0  ;;  %2595 = vmatpush3.bf16.msra.mxu1 %v2592_v60  ;;  %2343 = vmatprep.mubr.msk.f32.mxu1 %vm457_vm9, %v455_v61  ;;  %v315_v60 = vld [vmem:[%s3315_s3 + $0x30] sm:$0xff] }
 0x10f   : > { %v2596_v1 = vpack.c.bf16 %v2361_v62, %v694_v63 }
 0x111   : > { %2344 = vmatmul.mubr.msk.f32.gmra.mrb[6].mxu1 %vm457_vm9, %v456_v0  ;;  %2597 = vmatprep.subr.bf16.mxu1 %v2596_v1  ;;  %v2396_v3 = vpop.f32.mrb[16].mxu0 }
 0x112   : > { %2599 = vmatpush3.bf16.msra.mxu1 %v2596_v1  ;;  %v918_v4 = vpop.f32.mrb[17].mxu0  ;;  %2378 = vmatprep.mubr.msk.f32.mxu1 %vm457_vm9, %v2034_v2 }
 0x113   : > { %v2604_v6 = vpack.c.bf16 %v2396_v3, %v918_v4 }
 0x115   : > { %2379 = vmatmul.mubr.msk.f32.vlgmr.msra.gmra.mrb[0].mxu1 %vm457_vm9, %v2035_v5  ;;  %v2399_v8 = vpop.f32.mrb[18].mxu0  ;;  %2605 = vmatprep.subr.bf16.mxu1 %v2604_v6 }
 0x116   : > { %v928_v9 = vpop.f32.mrb[19].mxu0  ;;  %2607 = vmatpush3.bf16.msra.mxu1 %v2604_v6  ;;  %2381 = vmatprep.mubr.msk.f32.mxu1 %vm457_vm9, %v2036_v7 }
 0x117   : > { %v2608_v11 = vpack.c.bf16 %v2399_v8, %v928_v9  ;;  %v1266_v8 = vld [vmem:[%s3316_s4] sm:$0xff] }
 0x118   : > { %v2126_v9 = vld [vmem:[%s3316_s4 + $0x80] sm:$0xff] }
 0x119   : > { %2382 = vmatmul.mubr.msk.f32.gmra.mrb[2].mxu1 %vm457_vm9, %v2037_v10  ;;  %v2402_v13 = vpop.f32.mrb[20].mxu0  ;;  %2609 = vmatprep.subr.bf16.mxu1 %v2608_v11 }
 0x11a   : > { %v938_v14 = vpop.f32.mrb[21].mxu0  ;;  %2611 = vmatpush3.bf16.msra.mxu1 %v2608_v11  ;;  %2384 = vmatprep.mubr.msk.f32.mxu1 %vm457_vm9, %v2038_v12 }
 0x11b   : > { %v2612_v16 = vpack.c.bf16 %v2402_v13, %v938_v14 }
 0x11d   : > { %2385 = vmatmul.mubr.msk.f32.gmra.mrb[4].mxu1 %vm457_vm9, %v2039_v15  ;;  %v2405_v18 = vpop.f32.mrb[22].mxu0  ;;  %2613 = vmatprep.subr.bf16.mxu1 %v2612_v16 }
 0x11e   : > { %v948_v19 = vpop.f32.mrb[23].mxu0  ;;  %2615 = vmatpush3.bf16.msra.mxu1 %v2612_v16  ;;  %2387 = vmatprep.mubr.msk.f32.mxu1 %vm457_vm9, %v2040_v17 }
 0x11f   : > { %v2616_v21 = vpack.c.bf16 %v2405_v18, %v948_v19 }
 0x121   : > { %2388 = vmatmul.mubr.msk.f32.gmra.mrb[6].mxu1 %vm457_vm9, %v2041_v20  ;;  %2617 = vmatprep.subr.bf16.mxu1 %v2616_v21 }
 0x122   : > { %2619 = vmatpush3.bf16.msra.mxu1 %v2616_v21  ;;  %2422 = vmatprep.mubr.msk.f32.mxu1 %vm457_vm9, %v2060_v22 }
 0x125   : > { %2423 = vmatmul.mubr.msk.f32.vlgmr.msra.gmra.mrb[0].mxu1 %vm457_vm9, %v2061_v23 }
 0x126   : > { %2425 = vmatprep.mubr.msk.f32.mxu1 %vm457_vm9, %v2062_v24  ;;  %v1267_v24 = vld [vmem:[%s3316_s4 + $0x8] sm:$0xff] }
 0x129   : > { %2426 = vmatmul.mubr.msk.f32.gmra.mrb[2].mxu1 %vm457_vm9, %v2063_v25 }
 0x12a   : > { %2428 = vmatprep.mubr.msk.f32.mxu1 %vm457_vm9, %v2064_v26  ;;  %v1268_v26 = vld [vmem:[%s3316_s4 + $0x10] sm:$0xff] }
 0x12d   : > { %2429 = vmatmul.mubr.msk.f32.gmra.mrb[4].mxu1 %vm457_vm9, %v2065_v27 }
 0x12e   : > { %2431 = vmatprep.mubr.msk.f32.mxu1 %vm457_vm9, %v2066_v28 }
 0x131   : > { %2432 = vmatmul.mubr.msk.f32.gmra.mrb[6].mxu1 %vm457_vm9, %v2067_v29  ;;  %v1269_v29 = vld [vmem:[%s3316_s4 + $0x18] sm:$0xff] }
 0x132   : > { %2464 = vmatprep.mubr.msk.f32.mxu1 %vm457_vm9, %v1266_v8 }
 0x1f8   : > { %v2424_v33 = vpop.f32.mrb[0].mxu1 }
 0x1f9   : > { %v2676_v34 = vadd.f32 %v2424_v33, %v310_v31  ;;  %v1056_v35 = vpop.f32.mrb[1].mxu1  ;;  %v1270_v31 = vld [vmem:[%s3316_s4 + $0x20] sm:$0xff] }
 0x1fa   : > { %v2677_v36 = vadd.f32 %v1056_v35, %v309_v32 }
 0x1fb   : > { %v1112_v38 = vmul.f32 0.25, %v2676_v34  ;;  %vm1104_vm10 = vcmp.ge.f32.partialorder %v2676_v34, 0.0 }
 0x1fc   : > { %vm1103_vm11 = vcmp.ge.f32.partialorder %v2677_v36, 0.0  ;;  %v1111_v40 = vmul.f32 0.25, %v2677_v36  ;;  %v2427_v41 = vpop.f32.mrb[2].mxu1 }
 0x1fd   : > { %v2678_v42 = vadd.f32 %v2427_v41, %v312_v37  ;;  %v1066_v43 = vpop.f32.mrb[3].mxu1  ;;  %v1120_v47 = vsel %vm1104_vm10, %v2676_v34, %v1112_v38  ;;  %v1271_v34 = vld [vmem:[%s3316_s4 + $0x28] sm:$0xff]  ;;  %v2101_v41 = vld [vmem:[%s3316_s4 + $0x40] sm:$0xff] }
 0x1fe   : > { %v2679_v44 = vadd.f32 %v1066_v43, %v311_v39  ;;  %v1119_v45 = vsel %vm1103_vm11, %v2677_v36, %v1111_v40  ;;  %v1272_v36 = vld [vmem:[%s3316_s4 + $0x30] sm:$0xff]  ;;  %v1273_v39 = vld [vmem:[%s3316_s4 + $0x38] sm:$0xff] }
 0x1ff   : > { %v1114_v48 = vmul.f32 0.25, %v2678_v42  ;;  %2436 = vmatprep.mubr.msk.f32.mxu0 %vm1136_vm12, %v1119_v45  ;;  %vm1106_vm13 = vcmp.ge.f32.partialorder %v2678_v42, 0.0 }
 0x200   : > { %vm1105_vm14 = vcmp.ge.f32.partialorder %v2679_v44, 0.0  ;;  %v1113_v51 = vmul.f32 0.25, %v2679_v44  ;;  %v2430_v52 = vpop.f32.mrb[4].mxu1  ;;  %2437 = vmatmul.mubr.msk.f32.vlgmr.msra.gmra.mrb[24].mxu0 %vm1136_vm12, %v1120_v47 }
 0x201   : > { %v2680_v53 = vadd.f32 %v2430_v52, %v314_v46  ;;  %v1076_v54 = vpop.f32.mrb[5].mxu1  ;;  %2477 = vmatpush3.msra.mxu0 %v2092_v30  ;;  %v1122_v59 = vsel %vm1106_vm13, %v2678_v42, %v1114_v48  ;;  %v2103_v46 = vld [vmem:[%s3316_s4 + $0x50] sm:$0xff] }
 0x202   : > { %v2681_v55 = vadd.f32 %v1076_v54, %v313_v49  ;;  %v1121_v56 = vsel %vm1105_vm14, %v2679_v44, %v1113_v51  ;;  %2518 = vmatprep.subr.mxu0 %v2117_v50  ;;  %v2102_v44 = vld [vmem:[%s3316_s4 + $0x48] sm:$0xff]  ;;  %v2104_v49 = vld [vmem:[%s3316_s4 + $0x58] sm:$0xff]  ;;  %v2105_v51 = vld [vmem:[%s3316_s4 + $0x60] sm:$0xff] }
 0x203   : > { %v1116_v58 = vmul.f32 0.25, %v2680_v53  ;;  %2439 = vmatprep.mubr.msk.f32.mxu0 %vm1136_vm12, %v1121_v56  ;;  %vm1108_vm15 = vcmp.ge.f32.partialorder %v2680_v53, 0.0  ;;  %v2106_v54 = vld [vmem:[%s3316_s4 + $0x68] sm:$0xff] }
 0x204   : > { %vm1107_vm0 = vcmp.ge.f32.partialorder %v2681_v55, 0.0  ;;  %v1115_v61 = vmul.f32 0.25, %v2681_v55  ;;  %v2433_v62 = vpop.f32.mrb[6].mxu1  ;;  %2440 = vmatmul.mubr.msk.f32.gmra.mrb[26].mxu0 %vm1136_vm12, %v1122_v59 }
 0x205   : > { %v2682_v63 = vadd.f32 %v2433_v62, %v316_v57  ;;  %v1086_v0 = vpop.f32.mrb[7].mxu1  ;;  %v1124_v4 = vsel %vm1108_vm15, %v2680_v53, %v1116_v58  ;;  %v2127_v62 = vld [vmem:[%s3316_s4 + $0x88] sm:$0xff] }
 0x206   : > { %v2683_v1 = vadd.f32 %v1086_v0, %v315_v60  ;;  %v1123_v2 = vsel %vm1107_vm0, %v2681_v55, %v1115_v61  ;;  %v2128_v61 = vld [vmem:[%s3316_s4 + $0x90] sm:$0xff]  ;;  %v2130_v0 = vld [vmem:[%s3316_s4 + $0xa0] sm:$0xff] }
 0x207   : > { %v1118_v3 = vmul.f32 0.25, %v2682_v63  ;;  %2442 = vmatprep.mubr.msk.f32.mxu0 %vm1136_vm12, %v1123_v2  ;;  %vm1110_vm1 = vcmp.ge.f32.partialorder %v2682_v63, 0.0 }
 0x208   : > { %vm1109_vm2 = vcmp.ge.f32.partialorder %v2683_v1, 0.0  ;;  %v1117_v5 = vmul.f32 0.25, %v2683_v1  ;;  %2443 = vmatmul.mubr.msk.f32.gmra.mrb[28].mxu0 %vm1136_vm12, %v1124_v4 }
 0x209   : > { %v1126_v7 = vsel %vm1110_vm1, %v2682_v63, %v1118_v3  ;;  %v2129_v63 = vld [vmem:[%s3316_s4 + $0x98] sm:$0xff] }
 0x20a   : > { %v1125_v6 = vsel %vm1109_vm2, %v2683_v1, %v1117_v5  ;;  %v2131_v1 = vld [vmem:[%s3316_s4 + $0xa8] sm:$0xff]  ;;  %v2133_v3 = vld [vmem:[%s3316_s4 + $0xb8] sm:$0xff] }
 0x20b   : > { %2445 = vmatprep.mubr.msk.f32.mxu0 %vm1136_vm12, %v1125_v6 }
 0x20c   : > { %2446 = vmatmul.mubr.msk.f32.gmra.mrb[30].mxu0 %vm1136_vm12, %v1126_v7 }
 0x20d   : > { %2478 = vmatprep.mubr.msk.f32.mxu0 %vm1136_vm12, %v1119_v45 }
 0x210   : > { %2479 = vmatmul.mubr.msk.f32.vlgmr.msra.gmra.mrb[32].mxu0 %vm1136_vm12, %v1120_v47 }
 0x211   : > { %2481 = vmatprep.mubr.msk.f32.mxu0 %vm1136_vm12, %v1121_v56  ;;  %2519 = vmatpush3.msra.mxu0 %v2117_v50 }
 0x214   : > { %2482 = vmatmul.mubr.msk.f32.gmra.mrb[34].mxu0 %vm1136_vm12, %v1122_v59 }
 0x215   : > { %2484 = vmatprep.mubr.msk.f32.mxu0 %vm1136_vm12, %v1123_v2 }
 0x218   : > { %2485 = vmatmul.mubr.msk.f32.gmra.mrb[36].mxu0 %vm1136_vm12, %v1124_v4 }
 0x219   : > { %2487 = vmatprep.mubr.msk.f32.mxu0 %vm1136_vm12, %v1125_v6 }
 0x21c   : > { %2488 = vmatmul.mubr.msk.f32.gmra.mrb[38].mxu0 %vm1136_vm12, %v1126_v7 }
 0x21d   : > { %2520 = vmatprep.mubr.msk.f32.mxu0 %vm1136_vm12, %v1119_v45 }
 0x220   : > { %2521 = vmatmul.mubr.msk.f32.vlgmr.msra.gmra.mrb[40].mxu0 %vm1136_vm12, %v1120_v47 }
 0x221   : > { %2523 = vmatprep.mubr.msk.f32.mxu0 %vm1136_vm12, %v1121_v56  ;;  %v2107_v56 = vld [vmem:[%s3316_s4 + $0x70] sm:$0xff] }
 0x224   : > { %2524 = vmatmul.mubr.msk.f32.gmra.mrb[42].mxu0 %vm1136_vm12, %v1122_v59  ;;  %v2108_v59 = vld [vmem:[%s3316_s4 + $0x78] sm:$0xff] }
 0x225   : > { %2526 = vmatprep.mubr.msk.f32.mxu0 %vm1136_vm12, %v1123_v2  ;;  %v2132_v2 = vld [vmem:[%s3316_s4 + $0xb0] sm:$0xff] }
 0x228   : > { %2527 = vmatmul.mubr.msk.f32.gmra.mrb[44].mxu0 %vm1136_vm12, %v1124_v4 }
 0x229   : > { %2529 = vmatprep.mubr.msk.f32.mxu0 %vm1136_vm12, %v1125_v6  ;;  %v1128_v6 = vld [vmem:[%s3318_s6 + $0x8] sm:$0xff] }
 0x22c   : > { %2530 = vmatmul.mubr.msk.f32.gmra.mrb[46].mxu0 %vm1136_vm12, %v1126_v7  ;;  %v1127_v7 = vld [vmem:[%s3318_s6] sm:$0xff] }
 0x22d   : > { %2548 = vmatprep.mubr.msk.f32.mxu0 %vm457_vm9, %v2126_v9  ;;  %v1130_v9 = vld [vmem:[%s3318_s6 + $0x18] sm:$0xff] }
 0x2d3   : > { %v2438_v10 = vpop.f32.mrb[24].mxu0 }
 0x2d4   : > { %v1227_v11 = vpop.f32.mrb[25].mxu0 }
 0x2d5   : > { %v2620_v12 = vpack.c.bf16 %v2438_v10, %v1227_v11 }
 0x2d7   : > { %v2441_v13 = vpop.f32.mrb[26].mxu0  ;;  %2621 = vmatprep.subr.bf16.mxu1 %v2620_v12 }
 0x2d8   : > { %v1237_v14 = vpop.f32.mrb[27].mxu0  ;;  %2623 = vmatpush3.bf16.msra.mxu1 %v2620_v12  ;;  %v1129_v12 = vld [vmem:[%s3318_s6 + $0x10] sm:$0xff] }
 0x2d9   : > { %v2624_v15 = vpack.c.bf16 %v2441_v13, %v1237_v14 }
 0x2db   : > { %v2444_v16 = vpop.f32.mrb[28].mxu0  ;;  %2625 = vmatprep.subr.bf16.mxu1 %v2624_v15 }
 0x2dc   : > { %v1247_v17 = vpop.f32.mrb[29].mxu0  ;;  %2627 = vmatpush3.bf16.msra.mxu1 %v2624_v15 }
 0x2dd   : > { %v2628_v18 = vpack.c.bf16 %v2444_v16, %v1247_v17 }
 0x2df   : > { %v2447_v19 = vpop.f32.mrb[30].mxu0  ;;  %2629 = vmatprep.subr.bf16.mxu1 %v2628_v18 }
 0x2e0   : > { %v1257_v20 = vpop.f32.mrb[31].mxu0  ;;  %2631 = vmatpush3.bf16.msra.mxu1 %v2628_v18 }
 0x2e1   : > { %v2632_v21 = vpack.c.bf16 %v2447_v19, %v1257_v20  ;;  %v1132_v20 = vld [vmem:[%s3318_s6 + $0x28] sm:$0xff] }
 0x2e3   : > { %2633 = vmatprep.subr.bf16.mxu1 %v2632_v21  ;;  %v2480_v22 = vpop.f32.mrb[32].mxu0 }
 0x2e4   : > { %2635 = vmatpush3.bf16.msra.mxu1 %v2632_v21  ;;  %v1479_v23 = vpop.f32.mrb[33].mxu0  ;;  %v1131_v21 = vld [vmem:[%s3318_s6 + $0x20] sm:$0xff] }
 0x2e5   : > { %v2636_v25 = vpack.c.bf16 %v2480_v22, %v1479_v23 }
 0x2e7   : > { %2465 = vmatmul.mubr.msk.f32.vlgmr.msra.gmra.mrb[8].mxu1 %vm457_vm9, %v1267_v24  ;;  %v2483_v27 = vpop.f32.mrb[34].mxu0  ;;  %2637 = vmatprep.subr.bf16.mxu1 %v2636_v25 }
 0x2e8   : > { %v1489_v28 = vpop.f32.mrb[35].mxu0  ;;  %2639 = vmatpush3.bf16.msra.mxu1 %v2636_v25  ;;  %2467 = vmatprep.mubr.msk.f32.mxu1 %vm457_vm9, %v1268_v26  ;;  %v1134_v26 = vld [vmem:[%s3318_s6 + $0x38] sm:$0xff] }
 0x2e9   : > { %v2640_v30 = vpack.c.bf16 %v2483_v27, %v1489_v28  ;;  %v1133_v27 = vld [vmem:[%s3318_s6 + $0x30] sm:$0xff] }
 0x2eb   : > { %2468 = vmatmul.mubr.msk.f32.gmra.mrb[10].mxu1 %vm457_vm9, %v1269_v29  ;;  %v2486_v32 = vpop.f32.mrb[36].mxu0  ;;  %2641 = vmatprep.subr.bf16.mxu1 %v2640_v30 }
 0x2ec   : > { %v1499_v33 = vpop.f32.mrb[37].mxu0  ;;  %2643 = vmatpush3.bf16.msra.mxu1 %v2640_v30  ;;  %2470 = vmatprep.mubr.msk.f32.mxu1 %vm457_vm9, %v1270_v31 }
 0x2ed   : > { %v2644_v35 = vpack.c.bf16 %v2486_v32, %v1499_v33 }
 0x2ef   : > { %2471 = vmatmul.mubr.msk.f32.gmra.mrb[12].mxu1 %vm457_vm9, %v1271_v34  ;;  %v2489_v37 = vpop.f32.mrb[38].mxu0  ;;  %2645 = vmatprep.subr.bf16.mxu1 %v2644_v35 }
 0x2f0   : > { %v1509_v38 = vpop.f32.mrb[39].mxu0  ;;  %2647 = vmatpush3.bf16.msra.mxu1 %v2644_v35  ;;  %2473 = vmatprep.mubr.msk.f32.mxu1 %vm457_vm9, %v1272_v36 }
 0x2f1   : > { %v2648_v40 = vpack.c.bf16 %v2489_v37, %v1509_v38 }
 0x2f3   : > { %2474 = vmatmul.mubr.msk.f32.gmra.mrb[14].mxu1 %vm457_vm9, %v1273_v39  ;;  %2649 = vmatprep.subr.bf16.mxu1 %v2648_v40  ;;  %v2522_v42 = vpop.f32.mrb[40].mxu0 }
 0x2f4   : > { %2651 = vmatpush3.bf16.msra.mxu1 %v2648_v40  ;;  %v1732_v43 = vpop.f32.mrb[41].mxu0  ;;  %2506 = vmatprep.mubr.msk.f32.mxu1 %vm457_vm9, %v2101_v41 }
 0x2f5   : > { %v2652_v45 = vpack.c.bf16 %v2522_v42, %v1732_v43 }
 0x2f7   : > { %2507 = vmatmul.mubr.msk.f32.vlgmr.msra.gmra.mrb[8].mxu1 %vm457_vm9, %v2102_v44  ;;  %v2525_v47 = vpop.f32.mrb[42].mxu0  ;;  %2653 = vmatprep.subr.bf16.mxu0 %v2652_v45 }
 0x2f8   : > { %2668 = vmatprep.subr.bf16.mxu1 %v2652_v45  ;;  %v1742_v48 = vpop.f32.mrb[43].mxu0  ;;  %2655 = vmatpush3.bf16.msra.mxu0 %v2652_v45 }
 0x2f9   : > { %v2656_v50 = vpack.c.bf16 %v2525_v47, %v1742_v48  ;;  %2672 = vmatpush3.bf16.msra.mxu1 %v2652_v45  ;;  %2509 = vmatprep.mubr.msk.f32.mxu1 %vm457_vm9, %v2103_v46 }
 0x2fb   : > { %2510 = vmatmul.mubr.msk.f32.gmra.mrb[10].mxu1 %vm457_vm9, %v2104_v49  ;;  %v2528_v52 = vpop.f32.mrb[44].mxu0  ;;  %2657 = vmatprep.subr.bf16.mxu0 %v2656_v50 }
 0x2fc   : > { %2669 = vmatprep.subr.bf16.mxu1 %v2656_v50  ;;  %v1752_v53 = vpop.f32.mrb[45].mxu0  ;;  %2659 = vmatpush3.bf16.msra.mxu0 %v2656_v50 }
 0x2fd   : > { %v2660_v55 = vpack.c.bf16 %v2528_v52, %v1752_v53  ;;  %2673 = vmatpush3.bf16.msra.mxu1 %v2656_v50  ;;  %2512 = vmatprep.mubr.msk.f32.mxu1 %vm457_vm9, %v2105_v51 }
 0x2ff   : > { %2513 = vmatmul.mubr.msk.f32.gmra.mrb[12].mxu1 %vm457_vm9, %v2106_v54  ;;  %v2531_v57 = vpop.f32.mrb[46].mxu0  ;;  %2661 = vmatprep.subr.bf16.mxu0 %v2660_v55 }
 0x300   : > { %2670 = vmatprep.subr.bf16.mxu1 %v2660_v55  ;;  %v1762_v58 = vpop.f32.mrb[47].mxu0  ;;  %2663 = vmatpush3.bf16.msra.mxu0 %v2660_v55 }
 0x301   : > { %v2664_v60 = vpack.c.bf16 %v2531_v57, %v1762_v58  ;;  %2674 = vmatpush3.bf16.msra.mxu1 %v2660_v55  ;;  %2515 = vmatprep.mubr.msk.f32.mxu1 %vm457_vm9, %v2107_v56 }
 0x303   : > { %2516 = vmatmul.mubr.msk.f32.gmra.mrb[14].mxu1 %vm457_vm9, %v2108_v59  ;;  %2665 = vmatprep.subr.bf16.mxu0 %v2664_v60 }
 0x304   : > { %2671 = vmatprep.subr.bf16.mxu1 %v2664_v60  ;;  %2667 = vmatpush3.bf16.msra.mxu0 %v2664_v60 }
 0x305   : > { %2675 = vmatpush3.bf16.msra.mxu1 %v2664_v60  ;;  %2551 = vmatprep.mubr.msk.f32.mxu1 %vm457_vm9, %v2128_v61 }
 0x307   : > { %2549 = vmatmul.mubr.msk.f32.vlgmr.msra.gmra.mrb[48].mxu0 %vm457_vm9, %v2127_v62 }
 0x308   : > { %2552 = vmatmul.mubr.msk.f32.vlgmr.msra.gmra.mrb[10].mxu1 %vm457_vm9, %v2129_v63 }
 0x309   : > { %2554 = vmatprep.mubr.msk.f32.mxu1 %vm457_vm9, %v2130_v0 }
 0x30c   : > { %2555 = vmatmul.mubr.msk.f32.gmra.mrb[12].mxu1 %vm457_vm9, %v2131_v1 }
 0x30d   : > { %2557 = vmatprep.mubr.msk.f32.mxu1 %vm457_vm9, %v2132_v2 }
 0x310   : > { %2558 = vmatmul.mubr.msk.f32.gmra.mrb[14].mxu1 %vm457_vm9, %v2133_v3 }
 0x3ca   : > { %v2508_v4 = vpop.f32.mrb[8].mxu1 }
 0x3cb   : > { %v1617_v5 = vpop.f32.mrb[9].mxu1  ;;  %v2684_v8 = vadd.f32 %v2508_v4, %v1128_v6 }
 0x3cc   : > { %v2686_v10 = vadd.f32 %v1617_v5, %v1127_v7 }
 0x3da   : > { %v2550_v11 = vpop.f32.mrb[48].mxu0 }
 0x3db   : > { %v2685_v13 = vadd.f32 %v2684_v8, %v2550_v11  ;;  %v2553_v14 = vpop.f32.mrb[10].mxu1  ;;  %v1870_v15 = vpop.f32.mrb[49].mxu0 }
 0x3dc   : > { %v2688_v16 = vadd.f32 %v2553_v14, %v1130_v9  ;;  %v2687_v17 = vadd.f32 %v2686_v10, %v1870_v15  ;;  %v1880_v18 = vpop.f32.mrb[11].mxu1 }
 0x3dd   : > { %1918 = vst.msk [vmem:[%s271_s18 + $0x8] sm:$0xff] %vm1136_vm12, %v2685_v13  ;;  %v2689_v19 = vadd.f32 %v1880_v18, %v1129_v12 }
 0x3de   : > { %1920 = vst.msk [vmem:[%s271_s18 + $0x18] sm:$0xff] %vm1136_vm12, %v2688_v16  ;;  %1917 = vst.msk [vmem:[%s271_s18] sm:$0xff] %vm1136_vm12, %v2687_v17 }
 0x3df   : > { %1919 = vst.msk [vmem:[%s271_s18 + $0x10] sm:$0xff] %vm1136_vm12, %v2689_v19  ;;  %v2556_v22 = vpop.f32.mrb[12].mxu1 }
 0x3e0   : > { %v2690_v23 = vadd.f32 %v2556_v22, %v1132_v20  ;;  %v1890_v24 = vpop.f32.mrb[13].mxu1 }
 0x3e1   : > { %v2691_v25 = vadd.f32 %v1890_v24, %v1131_v21 }
 0x3e2   : > { %1922 = vst.msk [vmem:[%s271_s18 + $0x28] sm:$0xff] %vm1136_vm12, %v2690_v23 }
 0x3e3   : > { %1921 = vst.msk [vmem:[%s271_s18 + $0x20] sm:$0xff] %vm1136_vm12, %v2691_v25  ;;  %v2559_v28 = vpop.f32.mrb[14].mxu1 }
 0x3e4   : > { %v2692_v29 = vadd.f32 %v2559_v28, %v1134_v26  ;;  %v1900_v30 = vpop.f32.mrb[15].mxu1 }
 0x3e5   : > { %v2693_v31 = vadd.f32 %v1900_v30, %v1133_v27 }
 0x3e6   : > { %1924 = vst.msk [vmem:[%s271_s18 + $0x38] sm:$0xff] %vm1136_vm12, %v2692_v29 }
 0x3e7   : > { %1923 = vst.msk [vmem:[%s271_s18 + $0x30] sm:$0xff] %vm1136_vm12, %v2693_v31 }
 0x3e8   : > { %2778 = shalt.err (!%p2775_p3)
}
 0x3e9   : > { %s2779_s22 = scalar_lea.hbm %s3263_s19, 1024  ;;  %s2783_s9 = scalar_lea.hbm %s3319_s7, 2048 }
 0x3ea   : > { %p2780_p4 = scmp.ne.s32.totalorder %s3263_s19, %s2779_s22  ;;  %p2784_p9 = scmp.lt.u32.totalorder %s3263_s19, %s3319_s7 }
 0x3eb   : > { %p2785_p10 = scmp.lt.u32.totalorder %s2783_s9, %s2779_s22  ;;  %p2787_p12 = scmp.lt.u32.totalorder %s2779_s22, %s3263_s19 }
 0x3ec   : > { %p2781_p7 = pnand %p2780_p4, %p2910_p5 }
 0x3ed   : > { %p2786_p11 = por %p2785_p10, %p2784_p9 }
 0x3ee   : > { %p2782_p8 = pneg %p2781_p7 }
 0x3ef   : > { %p2788_p13 = por %p2787_p12, %p2786_p11 }
 0x3f1   : > { %p2789_p0 = pnand %p2788_p13, %p2782_p8 }
 0x3f3   : > { %2792 = shalt.err (!%p2789_p0)
}
 0x3f4   : > { %s2830_s16 = smov 128   ;;  %s2831_s17 = smov 8  }
 0x3f5   : > { %2724 = dma.vmem_to_hbm [thread:$0]  (%p2910_p5), %s3265_s13, 1024, %s3263_s19, %s3271_s28, %s2830_s16, %s2830_s16, %s2831_s17  }
 0x3f6 PF: > { %p2730_p1 = scmp.ge.s32.totalorder %s2827_s27, 2  ;;  %s1954_s20 = sand.u32 1, %s2815_s24  }
 0x3f7   : > { %s1955_s21 = scalar_lea.sflag [#allocation3], %s1954_s20 }
 0x3f8   : > { %p2727_p2 = pnand %p2730_p1, %p2914_p6 }
 0x3fa   : > { %2810 = dma.done.wait (!%p2727_p2), %s1955_s21, 1024  }
 0x3fb   : > { %2812 = vsyncadd (!%p2727_p2), %s1955_s21, 4294966272  ;;  %p17_p3 = scmp.ge.s32.totalorder %s2897_s30, 4   ;;  %s3322_s24 = smov %s2819_s25 }
 0x3fc   : > { %s3323_s25 = smov %s2823_s26  ;;  %s3324_s26 = smov %s2908_s10 }
 0x3fd   : > { %s3325_s27 = smov %s2897_s30  ;;  %19 = sbr.rel (!%p17_p3) target bundleno = 3 (0x3), region = 91 }
 0x404   :  { %1960 = vsyncpa [#allocation3], 1 }
 0x405   :  { %1962 = vsyncpa [#allocation3 + $0x1], 1 }

</bundles_post_ra>
